<compile_context>
chip_gen: v5e
topology: v5e:2x2
jax: 0.10.0
libtpu: 0.0.40
codegen_flags: <defaults>
</compile_context>

<pallas_src>
import functools

import jax
import jax.numpy as jnp
from jax.experimental import pallas as pl
from jax.experimental.pallas import tpu as pltpu


def mcpx_kernel(x_ref, wpath_ref, bpath_ref, bres_ref, wmerge_ref, bmerge_ref,
                out_ref, *, wp):
    """One (batch, H-tile) grid step.

    x_ref     : (Cin, L)        flat zero-padded tile: (tile_h+2, wp) rows
                                flattened, +1 pad element front/back.
    wpath_ref : (PH+OUT, 9*Cin) fused path-conv (+BN) weights; last OUT rows
                                are the residual 1x1 conv (centre block only).
    bpath_ref : (PH, 1)         fused path bias column.
    bres_ref  : (OUT, 1)        residual bias column.
    wmerge_ref: (OUT, PH)       per-batch merge weight (BN + attention folded).
    bmerge_ref: (OUT, 1)        merge bias column.
    out_ref   : (OUT, Npix)     Npix = tile_h * wp; lane-dense store (the two
                                pad columns per row are sliced off wrapper-side).
    """
    ph = bpath_ref.shape[0]
    npix = out_ref.shape[-1]

    x = x_ref[...]                                            # (Cin, L), lane-dense

    # Transposed im2col via 9 static lane-window slices (shifted windows):
    # patch block (dy, dx) at output pixel p reads x[:, dy*wp + dx + p].
    rows = [x[:, dy * wp + dx: dy * wp + dx + npix]
            for dy in range(3) for dx in range(3)]
    patches_t = jnp.concatenate(rows, axis=0)                 # (9*Cin, Npix)

    # All P path 3x3 convs (+folded BN) AND the residual 1x1 conv in one MXU
    # pass: K = 9*Cin, N = Npix (pixels on lanes).
    pre = jnp.dot(wpath_ref[...], patches_t.astype(wpath_ref.dtype),
                  preferred_element_type=jnp.float32)         # (PH+OUT, Npix)
    cat = jnp.maximum(pre[:ph] + bpath_ref[...], 0.0)         # (PH, Npix)
    resid = pre[ph:] + bres_ref[...]                          # (OUT, Npix)

    # Merge 1x1 conv (+folded BN; attention folded into the per-batch weight).
    merged = jnp.dot(wmerge_ref[...], cat.astype(wmerge_ref.dtype),
                     preferred_element_type=jnp.float32)
    merged = jnp.maximum(merged + bmerge_ref[...], 0.0)       # (OUT, Npix)

    out_ref[...] = (merged + resid).astype(out_ref.dtype)


def mcpx_forward(x_nchw, params, *, tile_h=None, matmul_dtype=None):
    """x_nchw: (B, Cin, H, W) (PyTorch layout). Returns (B, OUT, H, W)."""
    B, Cin, H, W = x_nchw.shape
    OUT, PH = params['merge_w_f'].shape
    P = params['attn_w_t'].shape[1]
    HID = PH // P
    Wp = W + 2

    # --- attention head hoisted to plain JAX, folded into a per-batch merge
    # weight (softmax weights just rescale merge-weight columns).
    pooled = jnp.mean(x_nchw, axis=(2, 3))                              # (B, Cin)
    attn = jax.nn.softmax(pooled @ params['attn_w_t'] + params['attn_b'], axis=1)
    attn_exp = jnp.repeat(attn, HID, axis=1)                            # (B, PH)
    wmerge_b = params['merge_w_f'][None] * attn_exp[:, None, :]         # (B, OUT, PH)

    wpath = params['path_res_w_t']                                      # (PH+OUT, 9*Cin)
    if matmul_dtype is not None:
        # bf16 is fine on v5e/v6e/v7x MXUs; accumulation stays f32 in-kernel.
        # Loosen the numeric tolerance when using it.
        wpath = wpath.astype(matmul_dtype)
        wmerge_b = wmerge_b.astype(matmul_dtype)

    # --- spatial tiling: whole image per step by default (>=256 pixels on the
    # MXU N axis). For large images pick tile_h so (Cin,L) + (OUT,Npix) blocks
    # (double-buffered) fit the scoped VMEM budget — re-budget on v7x (64 MiB
    # physical) and keep >=2 parallel grid steps for its two TensorCores.
    if tile_h is None or tile_h >= H:
        tile_h = H
    assert H % tile_h == 0, "tile_h must divide H"
    n_t = H // tile_h
    npix = tile_h * Wp
    L = (tile_h + 2) * Wp + 2

    # --- padded, channel-major input; per-tile halos materialized wrapper-side
    # and flattened so pixels sit densely on lanes inside the kernel.
    # TODO(synk): fold the zero-pad / halo materialization into an in-kernel DMA
    # (clamped copy + zero fill) to drop this extra HBM pass for large inputs.
    xp = jnp.pad(x_nchw, ((0, 0), (0, 0), (1, 1), (1, 1)))              # (B,Cin,H+2,Wp)
    tiles = jnp.stack(
        [xp[:, :, t * tile_h: t * tile_h + tile_h + 2, :] for t in range(n_t)],
        axis=1)                                                         # (B,n_t,Cin,th+2,Wp)
    tiles_flat = jnp.pad(tiles.reshape(B, n_t, Cin, (tile_h + 2) * Wp),
                         ((0, 0), (0, 0), (0, 0), (1, 1)))              # (B,n_t,Cin,L)

    sq = pl.Squeezed()
    # NOTE: the constant-index-map weight blocks could use pl.Buffered(1) to
    # trim pipeline buffering; negligible at these sizes so defaults are kept.
    out = pl.pallas_call(
        functools.partial(mcpx_kernel, wp=Wp),
        out_shape=jax.ShapeDtypeStruct((B, n_t, OUT, npix), x_nchw.dtype),
        grid=(B, n_t),
        in_specs=[
            # padded input tile: auto-pipelined (double-buffered) HBM->VMEM DMA.
            pl.BlockSpec((sq, sq, Cin, L), lambda b, i: (b, i, 0, 0)),
            # resident weights (constant index maps -> fetched once).
            pl.BlockSpec(wpath.shape, lambda b, i: (0, 0)),
            pl.BlockSpec((PH, 1), lambda b, i: (0, 0)),
            pl.BlockSpec((OUT, 1), lambda b, i: (0, 0)),
            # per-batch merge weight: batch is the outer grid axis, so this is
            # re-fetched once per batch; leading dim squeezed.
            pl.BlockSpec((sq, OUT, PH), lambda b, i: (b, 0, 0)),
            pl.BlockSpec((OUT, 1), lambda b, i: (0, 0)),
        ],
        out_specs=pl.BlockSpec((sq, sq, OUT, npix), lambda b, i: (b, i, 0, 0)),
        compiler_params=pltpu.CompilerParams(
            dimension_semantics=("parallel", "parallel")),
    )(tiles_flat, wpath, params['path_b_col'], params['res_b_col'],
      wmerge_b, params['merge_b_col'])

    # Strip the pad columns and reassemble NCHW (PyTorch output layout).
    out = out.reshape(B, n_t, OUT, tile_h, Wp)[..., 1:W + 1]
    return jnp.transpose(out, (0, 2, 1, 3, 4)).reshape(B, OUT, H, W)


def make_params(key, in_ch, hid_ch, out_ch, num_paths, dtype=jnp.float32):
    ks = jax.random.split(key, 16)
    eps = 1e-5
    P, HID, OUT, CIN = num_paths, hid_ch, out_ch, in_ch

    # per-path 3x3 conv (PyTorch OIHW) + bias, eval-mode BatchNorm folded in
    conv_w = jax.random.normal(ks[0], (P, HID, CIN, 3, 3)) * 0.1
    conv_b = jax.random.normal(ks[1], (P, HID)) * 0.1
    g = 1.0 + 0.1 * jax.random.normal(ks[2], (P, HID))
    bta = 0.1 * jax.random.normal(ks[3], (P, HID))
    rm = 0.1 * jax.random.normal(ks[4], (P, HID))
    rv = 1.0 + 0.1 * jax.random.uniform(ks[5], (P, HID))
    scale = g / jnp.sqrt(rv + eps)                                       # (P, HID)
    path_w_oihw = conv_w * scale[:, :, None, None, None]
    path_b = (conv_b - rm) * scale + bta                                 # (P, HID)

    # attention 1x1 conv
    attn_w = jax.random.normal(ks[6], (P, CIN)) * 0.1
    attn_b = jax.random.normal(ks[7], (P,)) * 0.1

    # merge 1x1 conv + folded BN
    merge_w = jax.random.normal(ks[8], (OUT, HID * P)) * 0.1
    merge_b0 = jax.random.normal(ks[9], (OUT,)) * 0.1
    mg = 1.0 + 0.1 * jax.random.normal(ks[10], (OUT,))
    mb = 0.1 * jax.random.normal(ks[11], (OUT,))
    mrm = 0.1 * jax.random.normal(ks[12], (OUT,))
    mrv = 1.0 + 0.1 * jax.random.uniform(ks[13], (OUT,))
    mscale = mg / jnp.sqrt(mrv + eps)
    merge_w_f = merge_w * mscale[:, None]                                # (OUT, P*HID)
    merge_b_f = (merge_b0 - mrm) * mscale + mb                           # (OUT,)

    # residual 1x1 conv
    res_w = jax.random.normal(ks[14], (OUT, CIN)) * 0.1
    res_b = jax.random.normal(ks[15], (OUT,)) * 0.1

    # --- kernel layouts (channel-major / flipped orientation) ---
    # path rows: row j = p*HID + h, column k = (dy*3 + dx)*CIN + c
    path_rows = jnp.transpose(path_w_oihw, (0, 1, 3, 4, 2)).reshape(P * HID, 9 * CIN)
    # residual rows: nonzero only in the centre-pixel (dy=dx=1) CIN block
    res_rows = jnp.zeros((OUT, 9 * CIN)).at[:, 4 * CIN:5 * CIN].set(res_w)
    path_res_w_t = jnp.concatenate([path_rows, res_rows], axis=0)        # (PH+OUT, 9*CIN)

    return dict(
        # kernel layouts
        path_res_w_t=path_res_w_t.astype(dtype),
        path_b_col=path_b.reshape(P * HID, 1).astype(dtype),
        res_b_col=res_b[:, None].astype(dtype),
        merge_w_f=merge_w_f.astype(dtype),                               # (OUT, P*HID)
        merge_b_col=merge_b_f[:, None].astype(dtype),
        attn_w_t=attn_w.T.astype(dtype),                                 # (CIN, P)
        attn_b=attn_b[None, :].astype(dtype),                            # (1, P)
        # reference-only layouts
        path_w_oihw=path_w_oihw.astype(dtype),
        path_b=path_b.astype(dtype),
        merge_b_f=merge_b_f.astype(dtype),
        res_w=res_w.astype(dtype),
        res_b=res_b.astype(dtype),
    )


def ref_forward(x_nchw, p):
    """Plain-JAX NCHW reference with the same (eval-mode, folded-BN) params."""
    P = p['path_b'].shape[0]
    pooled = jnp.mean(x_nchw, axis=(2, 3))
    attn = jax.nn.softmax(pooled @ p['attn_w_t'] + p['attn_b'], axis=1)
    outs = []
    for i in range(P):
        o = jax.lax.conv_general_dilated(
            x_nchw, p['path_w_oihw'][i], (1, 1), 'SAME',
            dimension_numbers=('NCHW', 'OIHW', 'NCHW'))
        o = jnp.maximum(o + p['path_b'][i][None, :, None, None], 0.0)
        outs.append(o * attn[:, i][:, None, None, None])
    cat = jnp.concatenate(outs, axis=1)
    merged = jnp.einsum('bchw,oc->bohw', cat, p['merge_w_f'])
    merged = jnp.maximum(merged + p['merge_b_f'][None, :, None, None], 0.0)
    resid = (jnp.einsum('bchw,oc->bohw', x_nchw, p['res_w'])
             + p['res_b'][None, :, None, None])
    return merged + resid


if __name__ == "__main__":
    in_ch, hid_ch, out_ch, num_paths = 4, 8, 8, 2
    B, H, W = 2, 16, 16

    key = jax.random.PRNGKey(0)
    kx, kp = jax.random.split(key)
    x = jax.random.normal(kx, (B, in_ch, H, W), jnp.float32)    # NCHW (PyTorch layout)
    params = make_params(kp, in_ch, hid_ch, out_ch, num_paths)

    out = jax.block_until_ready(jax.jit(mcpx_forward)(x, params))
    assert out.shape == (B, out_ch, H, W)

    ref = ref_forward(x, params)
    err = float(jnp.max(jnp.abs(out - ref)))
    assert err < 1e-3, f"max abs err {err}"
    print("KERNEL_OK")
</pallas_src>

<mosaic_0001>
module attributes {stable_mosaic.version = 11 : i64} {
  func.func @mcpx_kernel(%arg0: i32, %arg1: i32, %arg2: memref<1x1x4x326xf32, #tpu.memory_space<vmem>>, %arg3: memref<24x36xf32, #tpu.memory_space<vmem>>, %arg4: memref<16x1xf32, #tpu.memory_space<vmem>>, %arg5: memref<8x1xf32, #tpu.memory_space<vmem>>, %arg6: memref<1x8x16xf32, #tpu.memory_space<vmem>>, %arg7: memref<8x1xf32, #tpu.memory_space<vmem>>, %arg8: memref<1x1x8x288xf32, #tpu.memory_space<vmem>>) attributes {dimension_semantics = [#tpu.dimension_semantics<parallel>, #tpu.dimension_semantics<parallel>], iteration_bounds = array<i64: 2, 1>, scalar_prefetch = 0 : i64, scratch_operands = 0 : i64, tpu.core_type = #tpu.core_type<tc>, window_params = [{transform_indices = @transform_0, window_bounds = array<i64: 1, 1, 4, 326>}, {pipeline_mode = #tpu.pipeline_mode<synchronous>, transform_indices = @transform_1, window_bounds = array<i64: 24, 36>}, {pipeline_mode = #tpu.pipeline_mode<synchronous>, transform_indices = @transform_2, window_bounds = array<i64: 16, 1>}, {pipeline_mode = #tpu.pipeline_mode<synchronous>, transform_indices = @transform_3, window_bounds = array<i64: 8, 1>}, {transform_indices = @transform_4, window_bounds = array<i64: 1, 8, 16>}, {pipeline_mode = #tpu.pipeline_mode<synchronous>, transform_indices = @transform_5, window_bounds = array<i64: 8, 1>}, {transform_indices = @transform_6, window_bounds = array<i64: 1, 1, 8, 288>}]} {
    %c0 = arith.constant 0 : index
    %c0_0 = arith.constant 0 : index
    %c0_1 = arith.constant 0 : index
    %c0_2 = arith.constant 0 : index
    %0 = vector.load %arg2[%c0, %c0_0, %c0_1, %c0_2] : memref<1x1x4x326xf32, #tpu.memory_space<vmem>>, vector<1x1x4x326xf32>
    %1 = vector.shape_cast %0 : vector<1x1x4x326xf32> to vector<4x326xf32>
    %2 = vector.extract_strided_slice %1 {offsets = [0, 0], sizes = [4, 288], strides = [1, 1]} : vector<4x326xf32> to vector<4x288xf32>
    %3 = vector.extract_strided_slice %1 {offsets = [0, 1], sizes = [4, 288], strides = [1, 1]} : vector<4x326xf32> to vector<4x288xf32>
    %4 = vector.extract_strided_slice %1 {offsets = [0, 2], sizes = [4, 288], strides = [1, 1]} : vector<4x326xf32> to vector<4x288xf32>
    %5 = vector.extract_strided_slice %1 {offsets = [0, 18], sizes = [4, 288], strides = [1, 1]} : vector<4x326xf32> to vector<4x288xf32>
    %6 = vector.extract_strided_slice %1 {offsets = [0, 19], sizes = [4, 288], strides = [1, 1]} : vector<4x326xf32> to vector<4x288xf32>
    %7 = vector.extract_strided_slice %1 {offsets = [0, 20], sizes = [4, 288], strides = [1, 1]} : vector<4x326xf32> to vector<4x288xf32>
    %8 = vector.extract_strided_slice %1 {offsets = [0, 36], sizes = [4, 288], strides = [1, 1]} : vector<4x326xf32> to vector<4x288xf32>
    %9 = vector.extract_strided_slice %1 {offsets = [0, 37], sizes = [4, 288], strides = [1, 1]} : vector<4x326xf32> to vector<4x288xf32>
    %10 = vector.extract_strided_slice %1 {offsets = [0, 38], sizes = [4, 288], strides = [1, 1]} : vector<4x326xf32> to vector<4x288xf32>
    %11 = tpu.concatenate %2, %3, %4, %5, %6, %7, %8, %9, %10 in 0 : vector<4x288xf32>, vector<4x288xf32>, vector<4x288xf32>, vector<4x288xf32>, vector<4x288xf32>, vector<4x288xf32>, vector<4x288xf32>, vector<4x288xf32>, vector<4x288xf32> -> vector<36x288xf32>
    %c0_3 = arith.constant 0 : index
    %c0_4 = arith.constant 0 : index
    %12 = vector.load %arg3[%c0_3, %c0_4] : memref<24x36xf32, #tpu.memory_space<vmem>>, vector<24x36xf32>
    %cst = arith.constant dense<0.000000e+00> : vector<24x288xf32>
    %13 = tpu.matmul %12, %11, %cst {dimension_numbers = #tpu.dot_dimension_numbers<[1], [0], [0], [1], [0, 0, 1, 1], [], []>} : vector<24x36xf32>, vector<36x288xf32>, vector<24x288xf32> -> vector<24x288xf32>
    %14 = vector.extract_strided_slice %13 {offsets = [0, 0], sizes = [16, 288], strides = [1, 1]} : vector<24x288xf32> to vector<16x288xf32>
    %c0_5 = arith.constant 0 : index
    %c0_6 = arith.constant 0 : index
    %15 = vector.load %arg4[%c0_5, %c0_6] : memref<16x1xf32, #tpu.memory_space<vmem>>, vector<16x1xf32>
    %16 = vector.broadcast %15 : vector<16x1xf32> to vector<16x288xf32>
    %17 = arith.addf %14, %16 : vector<16x288xf32>
    %cst_7 = arith.constant 0.000000e+00 : f32
    %18 = vector.broadcast %cst_7 : f32 to vector<16x288xf32>
    %19 = arith.maximumf %17, %18 : vector<16x288xf32>
    %20 = vector.extract_strided_slice %13 {offsets = [16, 0], sizes = [8, 288], strides = [1, 1]} : vector<24x288xf32> to vector<8x288xf32>
    %c0_8 = arith.constant 0 : index
    %c0_9 = arith.constant 0 : index
    %21 = vector.load %arg5[%c0_8, %c0_9] : memref<8x1xf32, #tpu.memory_space<vmem>>, vector<8x1xf32>
    %22 = vector.broadcast %21 : vector<8x1xf32> to vector<8x288xf32>
    %23 = arith.addf %20, %22 : vector<8x288xf32>
    %c0_10 = arith.constant 0 : index
    %c0_11 = arith.constant 0 : index
    %c0_12 = arith.constant 0 : index
    %24 = vector.load %arg6[%c0_10, %c0_11, %c0_12] : memref<1x8x16xf32, #tpu.memory_space<vmem>>, vector<1x8x16xf32>
    %25 = vector.shape_cast %24 : vector<1x8x16xf32> to vector<8x16xf32>
    %cst_13 = arith.constant dense<0.000000e+00> : vector<8x288xf32>
    %26 = tpu.matmul %25, %19, %cst_13 {dimension_numbers = #tpu.dot_dimension_numbers<[1], [0], [0], [1], [0, 0, 1, 1], [], []>} : vector<8x16xf32>, vector<16x288xf32>, vector<8x288xf32> -> vector<8x288xf32>
    %c0_14 = arith.constant 0 : index
    %c0_15 = arith.constant 0 : index
    %27 = vector.load %arg7[%c0_14, %c0_15] : memref<8x1xf32, #tpu.memory_space<vmem>>, vector<8x1xf32>
    %28 = vector.broadcast %27 : vector<8x1xf32> to vector<8x288xf32>
    %29 = arith.addf %26, %28 : vector<8x288xf32>
    %cst_16 = arith.constant 0.000000e+00 : f32
    %30 = vector.broadcast %cst_16 : f32 to vector<8x288xf32>
    %31 = arith.maximumf %29, %30 : vector<8x288xf32>
    %32 = arith.addf %31, %23 : vector<8x288xf32>
    %c0_17 = arith.constant 0 : index
    %c0_18 = arith.constant 0 : index
    %c0_19 = arith.constant 0 : index
    %c0_20 = arith.constant 0 : index
    %33 = vector.load %arg8[%c0_17, %c0_18, %c0_19, %c0_20] : memref<1x1x8x288xf32, #tpu.memory_space<vmem>>, vector<1x1x8x288xf32>
    %34 = vector.shape_cast %33 : vector<1x1x8x288xf32> to vector<8x288xf32>
    %35 = vector.shape_cast %32 : vector<8x288xf32> to vector<1x1x8x288xf32>
    tpu.vector_store %arg8[%c0_17, %c0_18, %c0_19, %c0_20], %35 {strides = array<i32>} : memref<1x1x8x288xf32, #tpu.memory_space<vmem>>, vector<1x1x8x288xf32>,
    return
  }
  func.func @transform_0(%arg0: i32, %arg1: i32) -> (i32, i32, i32, i32) {
    %c0_i32 = arith.constant 0 : i32
    %c0_i32_0 = arith.constant 0 : i32
    %c0_i32_1 = arith.constant 0 : i32
    return %arg0, %arg1, %c0_i32, %c0_i32_0 : i32, i32, i32, i32
  }
  func.func @transform_1(%arg0: i32, %arg1: i32) -> (i32, i32) {
    %c0_i32 = arith.constant 0 : i32
    %c0_i32_0 = arith.constant 0 : i32
    %c0_i32_1 = arith.constant 0 : i32
    return %c0_i32, %c0_i32_0 : i32, i32
  }
  func.func @transform_2(%arg0: i32, %arg1: i32) -> (i32, i32) {
    %c0_i32 = arith.constant 0 : i32
    %c0_i32_0 = arith.constant 0 : i32
    %c0_i32_1 = arith.constant 0 : i32
    return %c0_i32, %c0_i32_0 : i32, i32
  }
  func.func @transform_3(%arg0: i32, %arg1: i32) -> (i32, i32) {
    %c0_i32 = arith.constant 0 : i32
    %c0_i32_0 = arith.constant 0 : i32
    %c0_i32_1 = arith.constant 0 : i32
    return %c0_i32, %c0_i32_0 : i32, i32
  }
  func.func @transform_4(%arg0: i32, %arg1: i32) -> (i32, i32, i32) {
    %c0_i32 = arith.constant 0 : i32
    %c0_i32_0 = arith.constant 0 : i32
    %c0_i32_1 = arith.constant 0 : i32
    return %arg0, %c0_i32, %c0_i32_0 : i32, i32, i32
  }
  func.func @transform_5(%arg0: i32, %arg1: i32) -> (i32, i32) {
    %c0_i32 = arith.constant 0 : i32
    %c0_i32_0 = arith.constant 0 : i32
    %c0_i32_1 = arith.constant 0 : i32
    return %c0_i32, %c0_i32_0 : i32, i32
  }
  func.func @transform_6(%arg0: i32, %arg1: i32) -> (i32, i32, i32, i32) {
    %c0_i32 = arith.constant 0 : i32
    %c0_i32_0 = arith.constant 0 : i32
    %c0_i32_1 = arith.constant 0 : i32
    return %arg0, %arg1, %c0_i32, %c0_i32_0 : i32, i32, i32, i32
  }
}

</mosaic_0001>

<bundles_post_ra>
// kernel: mul.11
= control target key start
LH: loop header
LB: loop body
LE: loop exit
PB: predicated region body
PF: predicated region fallthrough
CT: control target
= control target key end

     0   :  { %s10_s10 = smov 3  ;;  %vm12_vm0 = vcmask 64512   ;;  %s29_s11 = smov 8   ;;  %vm19_vm1 = vcmask 130112   ;;  %s49_s0 = inlined_call_operand.vmem [shape: f32[2,2,8], index: 0, kind: input, shape index: {}]   ;;  %s50_s1 = inlined_call_operand.vmem [shape: f32[2,16], index: 1, kind: output, shape index: {}]  }
   0x1   :  { %v27_v0 = vld [vmem:[%s49_s0 + $0x2] sm:$0x3]  ;;  %v8_v1 = vld [vmem:[%s49_s0] sm:$0x3]  ;;  %s15_s0 = smov 3 }
   0x2   :  { %7 = vst [vmem:[#allocation1 + $0x8] sm:$0x3] %v27_v0 }
   0x3   :  { %9 = vst [vmem:[#allocation1] sm:$0x3] %v8_v1 }
   0xa   :  { %v16_v2 = vld [vmem:[#allocation1 + $0x1] ss:$8 sm:%s15_s0]   ;;  %v11_v3 = vld [vmem:[#allocation1] ss:$8 sm:%s10_s10]  }
   0xb   :  { %17 = vrot.lane.b32.xlu0 %v16_v2, %s29_s11  ;;  %13 = vst.msk [vmem:[#allocation0] sm:$0x3] %vm12_vm0, %v11_v3  }
  0x7d   :  { %v18_v4 = vpop.permute.xlu0 %17  }
  0x7e   :  { %20 = vst.msk [vmem:[#allocation0] sm:$0x3] %vm19_vm1, %v18_v4  }
  0x85   :  { %v23_v5 = vld [vmem:[#allocation0] sm:$0x3] }
  0x86   :  { %26 = vst [vmem:[%s50_s1] sm:$0x3] %v23_v5 }

// kernel: mcpx_forward.1
= control target key start
LH: loop header
LB: loop body
LE: loop exit
PB: predicated region body
PF: predicated region fallthrough
CT: control target
= control target key end

     0   :  { %s957_s21 = smov 0   ;;  %s959_s22 = smov 0   ;;  %s1112_s0 = inlined_call_operand.vmem [shape: f32[2,1,4,326], index: 0, kind: input, shape index: {}]   ;;  %s1113_s1 = inlined_call_operand.vmem [shape: f32[24,36], index: 1, kind: input, shape index: {}]   ;;  %s1114_s2 = inlined_call_operand.vmem [shape: f32[16,1], index: 2, kind: input, shape index: {}]   ;;  %s1115_s3 = inlined_call_operand.vmem [shape: f32[8,1], index: 3, kind: input, shape index: {}]   ;;  %s1116_s4 = inlined_call_operand.vmem [shape: f32[2,8,16], index: 4, kind: input, shape index: {}]   ;;  %s1117_s5 = inlined_call_operand.vmem [shape: f32[8,1], index: 5, kind: input, shape index: {}]   ;;  %s1118_s6 = inlined_call_operand.vmem [shape: f32[2,1,8,288], index: 6, kind: output, shape index: {}]  }
   0x1   :  { %s961_s23 = smov 0  }
   0x2 LB: > { %s28_s24 = sadd.s32 1, %s907_s22  ;;  %p795_p0 = scmp.ge.s32.totalorder %s911_s23, 1  ;;  %s911_s23 = sphi %s961_s23, %s16_s23   ;;  %s907_s22 = sphi %s959_s22, %s1120_s22   ;;  %s903_s21 = sphi %s957_s21, %s1119_s21  }
   0x3   : > { %p30_p1 = scmp.ge.s32.totalorder %s28_s24, 2  ;;  %p241_p2 = scmp.lt.s32.totalorder %s911_s23, 3 }
   0x5   : > { %s1122_s24 = smov (%p30_p1, %s28_s24), 0  ;;  %p242_p3 = pnand %p795_p0, %p241_p2 }
   0x6   : > { %p283_p4 = scmp.lt.s32.totalorder (!%p242_p3), %s903_s21, 1  ;;  %s913_s29 = smov (!%p242_p3), 127  }
   0x7   : > { %245 = sbr.rel (%p242_p3) target bundleno = 521 (0x209), region = 44  ;;  %s914_s30 = smov (!%p242_p3), 126  }
   0x8   : > { %s915_s7 = smov (!%p242_p3), 110   ;;  %s916_s8 = smov (!%p242_p3), 109  }
   0x9   : > { %s917_s9 = smov (!%p242_p3), 108   ;;  %s918_s10 = smov (!%p242_p3), 92  }
   0xa   : > { %s919_s11 = smov (!%p242_p3), 91   ;;  %s920_s12 = smov (!%p242_p3), 90  }
   0xc   : > { %s1124_s21 = smov (!%p283_p4, %s903_s21), 1  ;;  %v921_v44 = vmov 0   ;;  %v573_v45 = vld [vmem:[%s1114_s2] sm:$0xff]  ;;  %vm349_vm0 = vcmask 1031168   ;;  %vm442_vm1 = vcmask 744448   ;;  %vm460_vm2 = vcmask 736256  }
   0xd   : > { %s816_s25 = smul.u32 12, %s1124_s21  ;;  %887 = vset.pattern.permute.xlu0 %v921_v44  ;;  %886 = vset.pattern.permute.xlu2 %v921_v44  ;;  %vm423_vm3 = vcmask 752640   ;;  %vm405_vm4 = vcmask 883712   ;;  %vm386_vm5 = vcmask 891904   ;;  %vm463_vm6 = vcmask 1043456  }
   0xe   : > { %888 = vset.pattern.permute.xlu1 %v921_v44  ;;  %vm368_vm7 = vcmask 900096   ;;  %vm331_vm8 = vcmask 1039360   ;;  %vm479_vm9 = vcmask 293888   ;;  %vm613_vm10 = vcmask 130048  }
   0xf   : > { %s291_s28 = scalar_lea.vmem %s1112_s0, %s816_s25  ;;  %vm685_vm11 = vcmask 261120  }
  0x10   : > { %v305_v0 = vld [vmem:[%s291_s28] sm:$0xff]  ;;  %v306_v1 = vld [vmem:[%s291_s28 + $0x8] sm:$0xf] }
  0x11   : > { %309 = vst [vmem:[#allocation1] ss:$2 sm:$0xff] %v305_v0 }
  0x12   : > { %311 = vst [vmem:[#allocation1 + $0x10] ss:$2 sm:$0xff] %v306_v1 }
  0x18   : > { %v981_v2 = vld.sshfl [vmem:[#allocation1] sm:$0xff pattern:$0x75316420]  ;;  %v983_v3 = vld.sshfl [vmem:[#allocation1 + $0x8] sm:$0xff pattern:$0x75316420] }
  0x19   : > { %319 = vst [vmem:[#allocation1 + $0x1] ss:$2 sm:$0xff] %v305_v0  ;;  %v985_v4 = vld.sshfl [vmem:[#allocation1 + $0x10] sm:$0xff pattern:$0x75316420] }
  0x1a   : > { %321 = vst [vmem:[#allocation1 + $0x11] ss:$2 sm:$0xff] %v306_v1 }
  0x20   : > { %v322_v5 = vld.sshfl [vmem:[#allocation1] sm:$0xff pattern:$0x75316420]  ;;  %v323_v6 = vld.sshfl [vmem:[#allocation1 + $0x8] sm:$0xff pattern:$0x75316420] }
  0x21   : > { %v851_v7 = vpack.i.bf16 %v323_v6, %v322_v5  ;;  %337 = vst [vmem:[#allocation1] ss:$2 sm:$0xff] %v305_v0  ;;  %v987_v8 = vld.sshfl [vmem:[#allocation1 + $0x10] sm:$0xff pattern:$0x75316420] }
  0x22   : > { %339 = vst [vmem:[#allocation1 + $0x10] ss:$2 sm:$0xff] %v306_v1 }
  0x23   : > { %852 = vrot.lane.b32.xlu2 %v851_v7, %s913_s29 }
  0x28   : > { %v340_v9 = vld.sshfl [vmem:[#allocation1] sm:$0xff pattern:$0x75316420]  ;;  %v341_v10 = vld.sshfl [vmem:[#allocation1 + $0x8] sm:$0xff pattern:$0x75316420] }
  0x29   : > { %356 = vst [vmem:[#allocation1 + $0x1] ss:$2 sm:$0xff] %v305_v0  ;;  %v856_v11 = vpack.i.bf16 %v341_v10, %v340_v9  ;;  %v342_v12 = vld.sshfl [vmem:[#allocation1 + $0x10] sm:$0xff pattern:$0x75316420] }
  0x2a   : > { %358 = vst [vmem:[#allocation1 + $0x11] ss:$2 sm:$0xff] %v306_v1 }
  0x2b   : > { %857 = vrot.lane.b32.xlu0 %v856_v11, %s914_s30 }
  0x30   : > { %v359_v13 = vld.sshfl [vmem:[#allocation1] sm:$0xff pattern:$0x75316420]  ;;  %v360_v14 = vld.sshfl [vmem:[#allocation1 + $0x8] sm:$0xff pattern:$0x75316420] }
  0x31   : > { %v861_v15 = vpack.i.bf16 %v360_v14, %v359_v13  ;;  %374 = vst [vmem:[#allocation1] ss:$2 sm:$0xff] %v305_v0  ;;  %v361_v16 = vld.sshfl [vmem:[#allocation1 + $0x10] sm:$0xff pattern:$0x75316420]  ;;  %v574_v14 = vld [vmem:[%s1114_s2 + $0x8] sm:$0xff] }
  0x32   : > { %376 = vst [vmem:[#allocation1 + $0x10] ss:$2 sm:$0xff] %v306_v1 }
  0x33   : > { %862 = vrot.lane.b32.xlu1 %v861_v15, %s915_s7 }
  0x38   : > { %v377_v17 = vld.sshfl [vmem:[#allocation1] sm:$0xff pattern:$0x75316420]  ;;  %v378_v18 = vld.sshfl [vmem:[#allocation1 + $0x8] sm:$0xff pattern:$0x75316420] }
  0x39   : > { %v866_v19 = vpack.i.bf16 %v378_v18, %v377_v17  ;;  %393 = vst [vmem:[#allocation1 + $0x1] ss:$2 sm:$0xff] %v305_v0  ;;  %v379_v20 = vld.sshfl [vmem:[#allocation1 + $0x10] sm:$0xff pattern:$0x75316420]  ;;  %v476_v17 = vld [vmem:[%s1113_s1] sm:$0xff] }
  0x3a   : > { %395 = vst [vmem:[#allocation1 + $0x11] ss:$2 sm:$0xff] %v306_v1  ;;  %384 = vrot.lane.b32.xlu0 %v379_v20, %s916_s8 }
  0x3b   : > { %867 = vrot.lane.b32.xlu2 %v866_v19, %s916_s8 }
  0x40   : > { %v396_v21 = vld.sshfl [vmem:[#allocation1] sm:$0xff pattern:$0x75316420]  ;;  %v397_v22 = vld.sshfl [vmem:[#allocation1 + $0x8] sm:$0xff pattern:$0x75316420] }
  0x41   : > { %411 = vst [vmem:[#allocation1] ss:$2 sm:$0xff] %v305_v0  ;;  %v398_v23 = vld.sshfl [vmem:[#allocation1 + $0x10] sm:$0xff pattern:$0x75316420]  ;;  %v871_v24 = vpack.i.bf16 %v397_v22, %v396_v21 }
  0x42   : > { %413 = vst [vmem:[#allocation1 + $0x10] ss:$2 sm:$0xff] %v306_v1 }
  0x43   : > { %872 = vrot.lane.b32.xlu2 %v871_v24, %s917_s9 }
  0x48   : > { %v414_v25 = vld.sshfl [vmem:[#allocation1] sm:$0xff pattern:$0x75316420]  ;;  %v415_v26 = vld.sshfl [vmem:[#allocation1 + $0x8] sm:$0xff pattern:$0x75316420] }
  0x49   : > { %v876_v27 = vpack.i.bf16 %v415_v26, %v414_v25  ;;  %430 = vst [vmem:[#allocation1 + $0x1] ss:$2 sm:$0xff] %v305_v0  ;;  %v416_v28 = vld.sshfl [vmem:[#allocation1 + $0x10] sm:$0xff pattern:$0x75316420]  ;;  %v597_v26 = vld [vmem:[%s1115_s3] sm:$0xff] }
  0x4a   : > { %432 = vst [vmem:[#allocation1 + $0x11] ss:$2 sm:$0xff] %v306_v1 }
  0x4b   : > { %877 = vrot.lane.b32.xlu1 %v876_v27, %s918_s10 }
  0x50   : > { %v433_v29 = vld.sshfl [vmem:[#allocation1] sm:$0xff pattern:$0x75316420]  ;;  %v434_v30 = vld.sshfl [vmem:[#allocation1 + $0x8] sm:$0xff pattern:$0x75316420] }
  0x51   : > { %448 = vst [vmem:[#allocation1] ss:$2 sm:$0xff] %v305_v0  ;;  %v435_v31 = vld.sshfl [vmem:[#allocation1 + $0x10] sm:$0xff pattern:$0x75316420]  ;;  %v881_v32 = vpack.i.bf16 %v434_v30, %v433_v29 }
  0x52   : > { %450 = vst [vmem:[#allocation1 + $0x10] ss:$2 sm:$0xff] %v306_v1  ;;  %440 = vrot.lane.b32.xlu2 %v435_v31, %s919_s11 }
  0x53   : > { %421 = vrot.lane.b32.xlu1 %v416_v28, %s918_s10 }
  0x58   : > { %v451_v33 = vld.sshfl [vmem:[#allocation1] sm:$0xff pattern:$0x75316420]  ;;  %v452_v34 = vld.sshfl [vmem:[#allocation1 + $0x8] sm:$0xff pattern:$0x75316420] }
  0x59   : > { %454 = vrot.lane.b32.xlu0 %v451_v33, %s920_s12  ;;  %v453_v35 = vld.sshfl [vmem:[#allocation1 + $0x10] sm:$0xff pattern:$0x75316420] }
  0x5a   : > { %347 = vrot.lane.b32.xlu2 %v342_v12, %s914_s30 }
  0x5b   : > { %882 = vrot.lane.b32.xlu1 %v881_v32, %s919_s11  ;;  %v477_v32 = vld [vmem:[%s1113_s1 + $0x8] sm:$0xff]  ;;  %s817_s11 = smul.u32 24, %s1124_s21 }
  0x5d   : > { %s304_s14 = scalar_lea.vmem %s1118_s6, %s817_s11 }
  0x61   : > { %456 = vrot.lane.b32.xlu0 %v452_v34, %s920_s12 }
  0x62   : > { %582 = vperm.xlu2 %886, %v574_v14  }
  0x63   : > { %403 = vrot.lane.b32.xlu1 %v398_v23, %s917_s9 }
  0x69   : > { %458 = vrot.lane.b32.xlu0 %v453_v35, %s920_s12 }
  0x6a   : > { %600 = vperm.xlu2 %886, %v597_v26  }
  0x6b   : > { %329 = vrot.lane.b32.xlu1 %v987_v8, %s913_s29 }
  0x71   : > { %366 = vrot.lane.b32.xlu0 %v361_v16, %s915_s7  ;;  %s797_s7 = sshll.u32 %s1124_s21, 3 }
  0x72   : > { %s295_s10 = scalar_lea.vmem %s1116_s4, %s797_s7 }
  0x79   : > { %577 = vperm.xlu0 %887, %v573_v45  }
  0x7d   : > { %v1000_v38 = vpop.permute.xlu2 %852 }
  0x7e   : > { %v855_v48 = vunpack.i.h.bf16 %v1000_v38  ;;  %v854_v0 = vunpack.i.l.bf16 %v1000_v38 }
  0x80   : > { %v332_v13 = vsel %vm331_vm8, %v854_v0, %v855_v48 }
  0x81   : > { %v464_v19 = vsel %vm463_vm6, %v981_v2, %v332_v13 }
  0x95   : > { %v1006_v41 = vpop.permute.xlu2 %867 }
  0x96   : > { %v869_v51 = vunpack.i.l.bf16 %v1006_v41  ;;  %v870_v56 = vunpack.i.h.bf16 %v1006_v41 }
  0x98   : > { %v387_v5 = vsel %vm386_vm5, %v869_v51, %v870_v56 }
  0x9d   : > { %v998_v37 = vpop.permute.xlu0 %857  ;;  %v873_v46 = vpop.permute.xlu2 %872 }
  0x9e   : > { %v875_v52 = vunpack.i.h.bf16 %v873_v46  ;;  %v874_v53 = vunpack.i.l.bf16 %v873_v46  ;;  %v860_v57 = vunpack.i.h.bf16 %v998_v37  ;;  %v859_v60 = vunpack.i.l.bf16 %v998_v37 }
  0xa0   : > { %v406_v6 = vsel %vm405_vm4, %v874_v53, %v875_v52  ;;  %v350_v10 = vsel %vm349_vm0, %v859_v60, %v860_v57 }
  0xa1   : > { %v470_v12 = vsel %vm463_vm6, %v387_v5, %v406_v6 }
  0xa5   : > { %v996_v36 = vpop.permute.xlu1 %862 }
  0xa6   : > { %v865_v58 = vunpack.i.h.bf16 %v996_v36  ;;  %v864_v59 = vunpack.i.l.bf16 %v996_v36 }
  0xa8   : > { %v369_v11 = vsel %vm368_vm7, %v864_v59, %v865_v58 }
  0xa9   : > { %v467_v15 = vsel %vm463_vm6, %v350_v10, %v369_v11 }
  0xac   : > { %v1004_v40 = vpop.permute.xlu0 %384  ;;  %v441_v7 = vpop.permute.xlu2 %440 }
  0xad   : > { %v388_v2 = vsel %vm386_vm5, %v870_v56, %v1004_v40 }
  0xb4   : > { %v348_v27 = vpop.permute.xlu2 %347 }
  0xb5   : > { %v351_v30 = vsel %vm349_vm0, %v860_v57, %v348_v27 }
  0xbc   : > { %v583_v41 = vpop.permute.xlu2 %582 }
  0xbd   : > { %v1002_v39 = vpop.permute.xlu1 %877 }
  0xbe   : > { %v880_v54 = vunpack.i.h.bf16 %v1002_v39  ;;  %v879_v55 = vunpack.i.l.bf16 %v1002_v39  ;;  %v607_v39 = vld [vmem:[%s1117_s5] sm:$0xff] }
  0xbf   : > { %610 = vperm.xlu1 %888, %v607_v39  }
  0xc0   : > { %v424_v1 = vsel %vm423_vm3, %v879_v55, %v880_v54 }
  0xc4   : > { %v601_v0 = vpop.permute.xlu2 %600 }
  0xc5   : > { %v1008_v42 = vpop.permute.xlu1 %421 }
  0xc6   : > { %v425_v21 = vsel %vm423_vm3, %v880_v54, %v1008_v42  ;;  %v475_v23 = vsel %vm463_vm6, %v1008_v42, %v441_v7 }
  0xcb   : > { %v455_v43 = vpop.permute.xlu0 %454 }
  0xcd   : > { %v883_v47 = vpop.permute.xlu1 %882 }
  0xce   : > { %v885_v49 = vunpack.i.h.bf16 %v883_v47  ;;  %v884_v50 = vunpack.i.l.bf16 %v883_v47 }
  0xd0   : > { %v443_v62 = vsel %vm442_vm1, %v884_v50, %v885_v49  ;;  %v444_v18 = vsel %vm442_vm1, %v885_v49, %v441_v7 }
  0xd1   : > { %v473_v8 = vsel %vm463_vm6, %v424_v1, %v443_v62  ;;  %v474_v24 = vsel %vm463_vm6, %v425_v21, %v444_v18 }
  0xd3   : > { %v457_v61 = vpop.permute.xlu0 %456 }
  0xd4   : > { %v461_v63 = vsel %vm460_vm2, %v455_v43, %v457_v61 }
  0xd5   : > { %799 = vmatpush.msk.msra.mxu0 %vm463_vm6, %v461_v63  ;;  %v404_v9 = vpop.permute.xlu1 %403 }
  0xd6   : > { %v407_v22 = vsel %vm405_vm4, %v875_v52, %v404_v9  ;;  %v472_v25 = vsel %vm463_vm6, %v1004_v40, %v404_v9 }
  0xd7   : > { %507 = vmatpush.msra.mxu0 %v473_v8  ;;  %v471_v28 = vsel %vm463_vm6, %v388_v2, %v407_v22 }
  0xd9   : > { %508 = vmatpush.msra.mxu0 %v470_v12 }
  0xdb   : > { %509 = vmatpush.msra.mxu0 %v467_v15  ;;  %v459_v16 = vpop.permute.xlu0 %458 }
  0xdc   : > { %807 = vmatpush.msk.msra.mxu2 %vm463_vm6, %v459_v16  ;;  %v462_v20 = vsel %vm460_vm2, %v457_v61, %v459_v16 }
  0xdd   : > { %510 = vmatpush.msra.mxu0 %v464_v19  ;;  %803 = vmatpush.msk.msra.mxu1 %vm463_vm6, %v462_v20  ;;  %v330_v29 = vpop.permute.xlu1 %329 }
  0xde   : > { %800 = vmatmul.msk.f32.vlgmr.msra.gmra.mxu0 %vm479_vm9, %v476_v17  ;;  %559 = vmatpush.msra.mxu2 %v475_v23  ;;  %v333_v33 = vsel %vm331_vm8, %v855_v48, %v330_v29  ;;  %v466_v36 = vsel %vm463_vm6, %v985_v4, %v330_v29  ;;  %v478_v4 = vld [vmem:[%s1113_s1 + $0x10] sm:$0xff]  ;;  %v606_v48 = vld [vmem:[%s295_s10] sm:$0xff] }
  0xdf   : > { %533 = vmatpush.msra.mxu1 %v474_v24  ;;  %v465_v38 = vsel %vm463_vm6, %v983_v3, %v333_v33 }
  0xe0   : > { %560 = vmatpush.msra.mxu2 %v472_v25 }
  0xe1   : > { %534 = vmatpush.msra.mxu1 %v471_v28 }
  0xe3   : > { %v367_v31 = vpop.permute.xlu0 %366 }
  0xe4   : > { %v370_v34 = vsel %vm368_vm7, %v865_v58, %v367_v31  ;;  %v469_v35 = vsel %vm463_vm6, %v348_v27, %v367_v31 }
  0xe5   : > { %561 = vmatpush.msra.mxu2 %v469_v35  ;;  %v468_v37 = vsel %vm463_vm6, %v351_v30, %v370_v34 }
  0xe6   : > { %801 = vmatmul.msk.f32.gmra.mxu0 %vm479_vm9, %v477_v32  ;;  %535 = vmatpush.msra.mxu1 %v468_v37 }
  0xe7   : > { %562 = vmatpush.msra.mxu2 %v466_v36 }
  0xe8   : > { %536 = vmatpush.msra.mxu1 %v465_v38  ;;  %808 = vmatmul.msk.f32.vlgmr.msra.gmra.mxu2 %vm479_vm9, %v476_v17 }
  0xe9   : > { %804 = vmatmul.msk.f32.vlgmr.msra.gmra.mxu1 %vm479_vm9, %v476_v17 }
  0xeb   : > { %v578_v40 = vpop.permute.xlu0 %577 }
  0xee   : > { %802 = vmatmul.msk.f32.gmra.mxu0 %vm479_vm9, %v478_v4 }
  0xf0   : > { %809 = vmatmul.msk.f32.gmra.mxu2 %vm479_vm9, %v477_v32 }
  0xf1   : > { %805 = vmatmul.msk.f32.gmra.mxu1 %vm479_vm9, %v477_v32 }
  0xf8   : > { %810 = vmatmul.msk.f32.gmra.mxu2 %vm479_vm9, %v478_v4 }
  0xf9   : > { %806 = vmatmul.msk.f32.gmra.mxu1 %vm479_vm9, %v478_v4 }
 0x131   : > { %v611_v60 = vpop.permute.xlu1 %610 }
 0x15b   : > { %v512_v3 = vpop.f32.mrf.mxu0 }
 0x15c   : > { %v585_v43 = vadd.f32 %v578_v40, %v512_v3 }
 0x15e   : > { %v591_v47 = vmax.f32 %v585_v43, 0.0 }
 0x163   : > { %v515_v42 = vpop.f32.mrf.mxu0 }
 0x164   : > { %v588_v44 = vadd.f32 %v583_v41, %v515_v42 }
 0x166   : > { %v538_v45 = vpop.f32.mrf.mxu1  ;;  %v594_v46 = vmax.f32 %v588_v44, 0.0 }
 0x167   : > { %v586_v51 = vadd.f32 %v578_v40, %v538_v45 }
 0x168   : > { %631 = vmatpush.msra.mxu3 %v594_v46 }
 0x169   : > { %v592_v54 = vmax.f32 %v586_v51, 0.0 }
 0x16a   : > { %632 = vmatpush.msra.mxu3 %v591_v47 }
 0x16b   : > { %v564_v49 = vpop.f32.mrf.mxu2  ;;  %811 = vmatmul.msk.f32.vlgmr.msra.gmra.mxu3 %vm613_vm10, %v606_v48  ;;  %v518_v61 = vpop.f32.mrf.mxu0 }
 0x16c   : > { %v587_v56 = vadd.f32 %v578_v40, %v564_v49  ;;  %v603_v1 = vadd.f32 %v601_v0, %v518_v61 }
 0x16e   : > { %v541_v50 = vpop.f32.mrf.mxu1  ;;  %v593_v59 = vmax.f32 %v587_v56, 0.0 }
 0x16f   : > { %v589_v52 = vadd.f32 %v583_v41, %v541_v50 }
 0x171   : > { %v595_v53 = vmax.f32 %v589_v52, 0.0 }
 0x173   : > { %v567_v55 = vpop.f32.mrf.mxu2  ;;  %651 = vmatpush.msrb.mxu3 %v595_v53 }
 0x174   : > { %v590_v57 = vadd.f32 %v583_v41, %v567_v55 }
 0x175   : > { %652 = vmatpush.msrb.mxu3 %v592_v54 }
 0x176   : > { %v596_v58 = vmax.f32 %v590_v57, 0.0  ;;  %812 = vmatmul.msk.f32.vlgmr.msrb.gmra.mxu3 %vm613_vm10, %v606_v48  ;;  %v544_v7 = vpop.f32.mrf.mxu1 }
 0x177   : > { %v604_v10 = vadd.f32 %v601_v0, %v544_v7 }
 0x178   : > { %671 = vmatpush.msra.mxu3 %v596_v58 }
 0x17a   : > { %672 = vmatpush.msra.mxu3 %v593_v59 }
 0x17b   : > { %v570_v13 = vpop.f32.mrf.mxu2 }
 0x17c   : > { %v605_v16 = vadd.f32 %v601_v0, %v570_v13 }
 0x17e   : > { %813 = vmatmul.msk.f32.vlgmr.msra.gmra.mxu3 %vm613_vm10, %v606_v48 }
 0x1ee   : > { %v634_v62 = vpop.f32.mrf.mxu3 }
 0x1ef   : > { %v635_v63 = vadd.f32 %v634_v62, %v611_v60 }
 0x1f1   : > { %v677_v5 = vmax.f32 %v635_v63, 0.0 }
 0x1f3   : > { %v680_v6 = vadd.f32 %v677_v5, %v603_v1 }
 0x1f5   : > { %683 = vst [vmem:[%s304_s14] sm:$0xff] %v680_v6 }
 0x1f9   : > { %v654_v8 = vpop.f32.mrf.mxu3 }
 0x1fa   : > { %v655_v9 = vadd.f32 %v654_v8, %v611_v60 }
 0x1fc   : > { %v678_v11 = vmax.f32 %v655_v9, 0.0 }
 0x1fe   : > { %v681_v12 = vadd.f32 %v678_v11, %v604_v10 }
 0x200   : > { %684 = vst [vmem:[%s304_s14 + $0x8] sm:$0xff] %v681_v12 }
 0x201   : > { %v674_v14 = vpop.f32.mrf.mxu3 }
 0x202   : > { %v675_v15 = vadd.f32 %v674_v14, %v611_v60 }
 0x204   : > { %v679_v17 = vmax.f32 %v675_v15, 0.0 }
 0x206   : > { %v682_v18 = vadd.f32 %v679_v17, %v605_v16 }
 0x208   : > { %686 = vst.msk [vmem:[%s304_s14 + $0x10] sm:$0xff] %vm685_vm11, %v682_v18 }
 0x209 PF: > { %s16_s23 = sadd.s32 1, %s911_s23   ;;  %s1119_s21 = smov %s907_s22 }
 0x20a   : > { %p13_p5 = scmp.ge.s32.totalorder %s16_s23, 4   ;;  %s1120_s22 = smov %s1122_s24 }
 0x20c   :  { %15 = sbr.rel (!%p13_p5) target bundleno = 2 (0x2), region = 90 }

</bundles_post_ra>
